<compile_context>
chip_gen: v7x
topology: tpu7x:2x2x1
jax: 0.10.0
libtpu: 0.0.40
codegen_flags: <defaults>
</compile_context>

<pallas_src>
import functools
import math

import jax
import jax.numpy as jnp
from jax import lax
from jax.experimental import pallas as pl
from jax.experimental.pallas import tpu as pltpu

_MIB = 1 << 20


# ---------------------------------------------------------------------------
# Helpers: generation-aware VMEM budget + BlockSpec with optional buffer count
# ---------------------------------------------------------------------------
def _vmem_budget():
    """~85% of physical VMEM (128 MiB on v5e/v6e, 64 MiB per core on v7x)."""
    try:
        cap = int(pltpu.get_tpu_info().vmem_capacity_bytes)
    except Exception:
        cap = 64 * _MIB  # conservative fallback valid on every generation
    return int(0.85 * cap)


def _vmem_limit(needed_bytes, budget):
    """Scoped-VMEM limit: actual per-step bytes + headroom, clamped to the budget."""
    headroom = max(needed_bytes // 4, 4 * _MIB)
    return int(min(budget, max(16 * _MIB, needed_bytes + headroom)))


def _spec(block_shape, index_map, buffers=None):
    """BlockSpec helper; buffers=1 disables double-buffering for constant-index blocks."""
    if buffers is not None:
        try:
            return pl.BlockSpec(block_shape, index_map,
                                pipeline_mode=pl.Buffered(buffers))
        except TypeError:
            # Older jax without pipeline_mode support: fall back to default buffering.
            pass
    return pl.BlockSpec(block_shape, index_map)


def _choose_linear_tiles(n_rows_total, hidden, x_it, wt_it, out_it, budget):
    """Row tile tm (up to 512 when it fits) and output-column tile tn for the fallback
    projection kernel; column tiling bounds VMEM when W^T is too large to sit resident."""
    tm_cands = ([n_rows_total] if n_rows_total <= 512 else []) + \
               [t for t in (512, 256, 128, 64, 32, 16, 8) if t < n_rows_total]
    tn_cands = [hidden]
    if hidden % 128 == 0:
        tn_cands += [t for t in (1024, 512, 256, 128) if t < hidden and hidden % t == 0]
    last = None
    for tm in tm_cands:
        for tn in tn_cands:
            w_bufs = 1 if tn == hidden else 2           # resident W^T only when not col-tiled
            need = (2 * tm * hidden * x_it              # x block (double-buffered)
                    + w_bufs * hidden * tn * wt_it      # W^T block
                    + w_bufs * tn * 4                   # bias block
                    + 2 * tm * tn * out_it)             # output block (double-buffered)
            last = (tm, tn, need)
            if need <= budget:
                return tm, tn, need
    return last


# ---------------------------------------------------------------------------
# Kernel bodies
# ---------------------------------------------------------------------------
def _attention_heads(q_ref, k_ref, v_ref, attn_ref, qv_acc, *,
                     heads, dim_per_head, scale, compute_dtype):
    """Per-(batch, q-tile) attention over ALL heads.

    q_ref: (tq, hidden)    k_ref/v_ref: (Sk, hidden)
    attn_ref: (H, tq, Sk)  qv_acc: (tq, hidden) f32 VMEM scratch.
    """
    for h in range(heads):  # static, small unrolled loop
        sl = slice(h * dim_per_head, (h + 1) * dim_per_head)
        # Scale q (tq*D mults, not tq*Sk), then feed the MXU in compute_dtype
        # (bf16 for f32 inputs) with f32 accumulation.
        qh = (q_ref[:, sl] * scale).astype(compute_dtype)
        kh = k_ref[:, sl].astype(compute_dtype)
        vh = v_ref[:, sl].astype(compute_dtype)

        # scores = (q*scale) @ k^T  — contraction on D, f32 accumulation
        s = lax.dot_general(
            qh, kh,
            dimension_numbers=(((1,), (1,)), ((), ())),
            preferred_element_type=jnp.float32)             # (tq, Sk)

        # Numerically stable softmax in f32; exact reciprocal (EUP) so the
        # returned attention rows sum to 1.
        m = jnp.max(s, axis=-1, keepdims=True)
        p = jnp.exp(s - m)
        inv = pl.reciprocal(jnp.sum(p, axis=-1, keepdims=True), approx=False)
        attn = p * inv

        attn_ref[h] = attn.astype(attn_ref.dtype)

        # Per-head write into the f32 scratch bounds live ranges (no concat copy).
        qv_acc[:, sl] = jnp.dot(attn.astype(compute_dtype), vh,
                                preferred_element_type=jnp.float32)  # (tq, D)


def _attention_proj_kernel(q_ref, k_ref, v_ref, wT_ref, b_ref, attn_ref, out_ref,
                           qv_acc, *, heads, dim_per_head, scale, compute_dtype):
    """Fused attention + output projection epilogue: out = qv @ W^T + b.
    Eliminates the HBM round trip of qv entirely."""
    _attention_heads(q_ref, k_ref, v_ref, attn_ref, qv_acc,
                     heads=heads, dim_per_head=dim_per_head, scale=scale,
                     compute_dtype=compute_dtype)
    qv = qv_acc[...].astype(compute_dtype)
    y = jnp.dot(qv, wT_ref[...].astype(compute_dtype),
                preferred_element_type=jnp.float32)
    out_ref[...] = (y + b_ref[...]).astype(out_ref.dtype)   # one lane-dense store


def _attention_kernel(q_ref, k_ref, v_ref, attn_ref, qv_ref, qv_acc, *,
                      heads, dim_per_head, scale, compute_dtype):
    """Attention only (projection done by a separate kernel; large-hidden fallback)."""
    _attention_heads(q_ref, k_ref, v_ref, attn_ref, qv_acc,
                     heads=heads, dim_per_head=dim_per_head, scale=scale,
                     compute_dtype=compute_dtype)
    qv_ref[...] = qv_acc[...].astype(qv_ref.dtype)           # one lane-dense store


def _linear_kernel(x_ref, wT_ref, b_ref, o_ref):
    """y = x @ W^T + b, tiled over rows (grid i) and output columns (grid j)."""
    x = x_ref[...].astype(wT_ref.dtype)                      # MXU operands in compute dtype
    y = jnp.dot(x, wT_ref[...], preferred_element_type=jnp.float32)
    o_ref[...] = (y + b_ref[...]).astype(o_ref.dtype)


# ---------------------------------------------------------------------------
# Module
# ---------------------------------------------------------------------------
class MultiHeadAttentionPallas:
    def __init__(self, heads, hidden_dim, dropout=0.5, *, key=None,
                 compute_dtype=jnp.bfloat16, attn_dtype=jnp.bfloat16,
                 fuse_projection="auto"):
        assert hidden_dim % heads == 0
        self._heads = heads
        self._dim_per_head = hidden_dim // heads
        self._hidden_dim = hidden_dim
        self._k = self._dim_per_head ** (-0.5)
        self._dropout = dropout  # unused in forward (matches the torch module)
        self._compute_dtype = jnp.dtype(compute_dtype) if compute_dtype is not None else None
        self._attn_dtype = jnp.dtype(attn_dtype) if attn_dtype is not None else None
        self._fuse = fuse_projection  # "auto" | True | False

        # Deterministic nn.Linear-style init: U(-1/sqrt(in), 1/sqrt(in))
        if key is None:
            key = jax.random.PRNGKey(42)
        kw, kb = jax.random.split(key)
        bound = 1.0 / math.sqrt(hidden_dim)
        # torch nn.Linear weight shape is (out_features, in_features)
        self.out_weight = jax.random.uniform(
            kw, (hidden_dim, hidden_dim), jnp.float32, -bound, bound)
        self.out_bias = jax.random.uniform(
            kb, (hidden_dim,), jnp.float32, -bound, bound)

        # Cached for the kernels: pre-transposed W in the MXU compute dtype; 2-D f32 bias.
        wt_dtype = self._compute_dtype or jnp.float32
        self.out_weight_t = jnp.asarray(self.out_weight.T, dtype=wt_dtype)   # (in, out)
        self.out_bias_2d = self.out_bias.reshape(1, hidden_dim)              # (1, hidden), f32

    def __call__(self, q, k, v, mask=None):
        # TODO(synk): mask path (masked_fill on scores) not implemented; reference uses mask=None.
        assert mask is None, "mask path not implemented"
        qbs, qseq, qdim = q.shape
        kbs, kseq, kdim = k.shape
        vbs, vseq, vdim = v.shape
        assert self._hidden_dim == qdim and qdim == kdim and kdim == vdim
        assert kseq == vseq

        H, D, hidden = self._heads, self._dim_per_head, self._hidden_dim
        cdt = self._compute_dtype or q.dtype
        attn_dtype = self._attn_dtype or q.dtype
        out_dtype = q.dtype

        q_it = q.dtype.itemsize
        kv_it = k.dtype.itemsize
        attn_it = jnp.dtype(attn_dtype).itemsize
        out_it = jnp.dtype(out_dtype).itemsize
        wt_it = self.out_weight_t.dtype.itemsize

        budget = _vmem_budget()

        # ----- q-row tile + fuse decision from explicit per-block VMEM accounting -----
        max_tile = 128 if budget <= 64 * _MIB else 256        # v7x (64 MiB) vs v5e/v6e (128 MiB)
        tq_cands = ([qseq] if qseq <= max_tile else []) + \
                   [t for t in (256, 128, 64, 32, 16, 8)
                    if t <= max_tile and t < qseq and qseq % t == 0]
        if not tq_cands:
            tq_cands = [qseq]

        def attn_bytes(tq, fused):
            b = (2 * tq * hidden * q_it                  # q block (double-buffered)
                 + 2 * (kseq * hidden * kv_it)           # resident K + V, single-buffered each
                 + 2 * H * tq * kseq * attn_it           # attention output (double-buffered)
                 + tq * hidden * 4)                      # qv f32 scratch
            if fused:
                b += (hidden * hidden * wt_it            # resident W^T (single-buffered)
                      + hidden * 4                       # bias
                      + 2 * tq * hidden * out_it)        # projected output block
            else:
                b += 2 * tq * hidden * out_it            # qv output block
            return b

        def first_fit(fused):
            for t in tq_cands:
                n = attn_bytes(t, fused)
                if n <= budget:
                    return t, n
            return None

        if self._fuse == "auto":
            fit = first_fit(True)
            fuse = fit is not None
            if not fuse:
                fit = first_fit(False)
        else:
            fuse = bool(self._fuse)
            fit = first_fit(fuse)
        if fit is None:
            # TODO(synk): Sk-tiled online-softmax (flash) path for long sequences.
            raise NotImplementedError(
                "attention working set exceeds the VMEM budget for this shape; "
                "an Sk-tiled online-softmax path is required")
        tq, needed = fit
        nq = qseq // tq
        attn_vmem = _vmem_limit(needed, budget)

        # Shared specs.  K/V (and W^T/bias in the fused path) have a constant block index
        # across q-tiles -> resident in VMEM; Buffered(1) removes the useless second buffer.
        q_spec = _spec((pl.Squeezed(), tq, hidden), lambda b, qi: (b, qi, 0))
        k_spec = _spec((pl.Squeezed(), kseq, hidden), lambda b, qi: (b, 0, 0), buffers=1)
        v_spec = _spec((pl.Squeezed(), vseq, hidden), lambda b, qi: (b, 0, 0), buffers=1)
        attn_spec = pl.BlockSpec((pl.Squeezed(), H, tq, kseq), lambda b, qi: (b, 0, qi, 0))
        row_spec = pl.BlockSpec((pl.Squeezed(), tq, hidden), lambda b, qi: (b, qi, 0))

        if fuse:
            wT_spec = _spec((hidden, hidden), lambda b, qi: (0, 0), buffers=1)
            b_spec = _spec((1, hidden), lambda b, qi: (0, 0), buffers=1)
            attention, out = pl.pallas_call(
                functools.partial(_attention_proj_kernel, heads=H, dim_per_head=D,
                                  scale=self._k, compute_dtype=cdt),
                out_shape=(
                    jax.ShapeDtypeStruct((qbs, H, qseq, kseq), attn_dtype),
                    jax.ShapeDtypeStruct((qbs, qseq, hidden), out_dtype),
                ),
                grid_spec=pltpu.PrefetchScalarGridSpec(
                    num_scalar_prefetch=0,
                    grid=(qbs, nq),
                    in_specs=[q_spec, k_spec, v_spec, wT_spec, b_spec],
                    out_specs=[attn_spec, row_spec],
                    scratch_shapes=[pltpu.VMEM((tq, hidden), jnp.float32)],
                ),
                compiler_params=pltpu.CompilerParams(
                    dimension_semantics=("parallel", "parallel"),
                    vmem_limit_bytes=attn_vmem),
            )(q, k, v, self.out_weight_t, self.out_bias_2d)
            return out, attention

        # ----- non-fused fallback: attention kernel, then a separate projection kernel -----
        attention, qv = pl.pallas_call(
            functools.partial(_attention_kernel, heads=H, dim_per_head=D,
                              scale=self._k, compute_dtype=cdt),
            out_shape=(
                jax.ShapeDtypeStruct((qbs, H, qseq, kseq), attn_dtype),
                jax.ShapeDtypeStruct((qbs, qseq, hidden), out_dtype),
            ),
            grid_spec=pltpu.PrefetchScalarGridSpec(
                num_scalar_prefetch=0,
                grid=(qbs, nq),
                in_specs=[q_spec, k_spec, v_spec],
                out_specs=[attn_spec, row_spec],
                scratch_shapes=[pltpu.VMEM((tq, hidden), jnp.float32)],
            ),
            compiler_params=pltpu.CompilerParams(
                dimension_semantics=("parallel", "parallel"),
                vmem_limit_bytes=attn_vmem),
        )(q, k, v)

        # Output projection: y = qv @ W^T + b, rows x output-columns tiled.
        N = qbs * qseq
        x = qv.reshape(N, hidden)                 # collapses leading dims only; no transpose
        tm, tn, lin_needed = _choose_linear_tiles(N, hidden, x.dtype.itemsize,
                                                  wt_it, out_it, budget)
        n_rows = pl.cdiv(N, tm)                   # last partial block: OOB rows read, results
        n_cols = hidden // tn                     # discarded on store (rows are independent)
        w_bufs = 1 if n_cols == 1 else None       # resident W^T only when not column-tiled

        out_flat = pl.pallas_call(
            _linear_kernel,
            out_shape=jax.ShapeDtypeStruct((N, hidden), out_dtype),
            grid_spec=pltpu.PrefetchScalarGridSpec(
                num_scalar_prefetch=0,
                grid=(n_rows, n_cols),
                in_specs=[
                    _spec((tm, hidden), lambda i, j: (i, 0)),
                    _spec((hidden, tn), lambda i, j: (0, j), buffers=w_bufs),
                    _spec((1, tn), lambda i, j: (0, j), buffers=w_bufs),
                ],
                out_specs=pl.BlockSpec((tm, tn), lambda i, j: (i, j)),
            ),
            compiler_params=pltpu.CompilerParams(
                dimension_semantics=("parallel", "parallel"),
                vmem_limit_bytes=_vmem_limit(lin_needed, budget)),
        )(x, self.out_weight_t, self.out_bias_2d)

        out = out_flat.reshape(qbs, qseq, hidden)
        return out, attention


# ---------------------------------------------------------------------------
# Pure-JAX reference reproducing the torch forward exactly (mask=None)
# ---------------------------------------------------------------------------
def _reference(q, k, v, heads, hidden_dim, out_w, out_b):
    B, Sq, _ = q.shape
    _, Sk, _ = k.shape
    D = hidden_dim // heads
    scale = D ** (-0.5)
    qh = q.reshape(B, Sq, heads, D).transpose(0, 2, 1, 3)      # (B,H,Sq,D)
    kh = k.reshape(B, Sk, heads, D).transpose(0, 2, 3, 1)      # (B,H,D,Sk)
    vh = v.reshape(B, Sk, heads, D).transpose(0, 2, 1, 3)      # (B,H,Sk,D)
    att = jnp.matmul(qh, kh) * scale
    att = jax.nn.softmax(att, axis=-1)
    qv = jnp.matmul(att, vh)                                   # (B,H,Sq,D)
    qv = qv.transpose(0, 2, 1, 3).reshape(B, Sq, hidden_dim)
    return qv @ out_w.T + out_b, att


if __name__ == "__main__":
    key = jax.random.PRNGKey(0)
    kq, kk, kv = jax.random.split(key, 3)

    batch, seq, heads, hidden = 2, 8, 4, 32
    q = jax.random.normal(kq, (batch, seq, hidden), jnp.float32)
    k = jax.random.normal(kk, (batch, seq, hidden), jnp.float32)
    v = jax.random.normal(kv, (batch, seq, hidden), jnp.float32)

    wkey = jax.random.PRNGKey(1)

    # Path A: exact f32 compute / f32 attention / separate projection kernel.
    # Validates numerics tightly and exercises the non-fused (linear) code path.
    mha_exact = MultiHeadAttentionPallas(heads, hidden, key=wkey,
                                         compute_dtype=jnp.float32,
                                         attn_dtype=jnp.float32,
                                         fuse_projection=False)
    out_a, attn_a = mha_exact(q, k, v)
    jax.block_until_ready(out_a)
    jax.block_until_ready(attn_a)

    ref_out, ref_attn = _reference(q, k, v, heads, hidden,
                                   mha_exact.out_weight, mha_exact.out_bias)
    assert out_a.shape == (batch, seq, hidden)
    assert attn_a.shape == (batch, heads, seq, seq)
    assert jnp.allclose(out_a, ref_out, atol=2e-3, rtol=2e-3)
    assert jnp.allclose(attn_a, ref_attn, atol=2e-3, rtol=2e-3)

    # Path B: default performance config — bf16 MXU operands, bf16 attention storage,
    # fused projection epilogue (no qv HBM round trip).
    mha_fast = MultiHeadAttentionPallas(heads, hidden, key=wkey)
    out_b, attn_b = mha_fast(q, k, v)
    jax.block_until_ready(out_b)
    jax.block_until_ready(attn_b)

    assert out_b.shape == (batch, seq, hidden)
    assert attn_b.shape == (batch, heads, seq, seq)
    assert attn_b.dtype == jnp.bfloat16
    assert jnp.allclose(out_b, ref_out, atol=5e-2, rtol=5e-2)
    assert jnp.allclose(attn_b.astype(jnp.float32), ref_attn, atol=2e-2, rtol=5e-2)

    print("KERNEL_OK")
</pallas_src>

<mosaic_0001>
module attributes {stable_mosaic.version = 11 : i64} {
  func.func @_attention_kernel(%arg0: i32, %arg1: i32, %arg2: memref<1x8x32xf32, #tpu.memory_space<vmem>>, %arg3: memref<1x8x32xf32, #tpu.memory_space<vmem>>, %arg4: memref<1x8x32xf32, #tpu.memory_space<vmem>>, %arg5: memref<1x4x8x8xf32, #tpu.memory_space<vmem>>, %arg6: memref<1x8x32xf32, #tpu.memory_space<vmem>>, %arg7: memref<8x32xf32, #tpu.memory_space<vmem>>) attributes {dimension_semantics = [#tpu.dimension_semantics<parallel>, #tpu.dimension_semantics<parallel>], iteration_bounds = array<i64: 2, 1>, scalar_prefetch = 0 : i64, scratch_operands = 1 : i64, tpu.core_type = #tpu.core_type<tc>, window_params = [{transform_indices = @transform_0, window_bounds = array<i64: 1, 8, 32>}, {pipeline_mode = #tpu.pipeline_mode<synchronous>, transform_indices = @transform_1, window_bounds = array<i64: 1, 8, 32>}, {pipeline_mode = #tpu.pipeline_mode<synchronous>, transform_indices = @transform_2, window_bounds = array<i64: 1, 8, 32>}, {transform_indices = @transform_3, window_bounds = array<i64: 1, 4, 8, 8>}, {transform_indices = @transform_4, window_bounds = array<i64: 1, 8, 32>}]} {
    %c0 = arith.constant 0 : index
    %c0_0 = arith.constant 0 : index
    %c0_1 = arith.constant 0 : index
    %0 = vector.load %arg2[%c0, %c0_0, %c0_1] : memref<1x8x32xf32, #tpu.memory_space<vmem>>, vector<1x8x8xf32>
    %1 = vector.shape_cast %0 : vector<1x8x8xf32> to vector<8x8xf32>
    %cst = arith.constant 0.353553385 : f32
    %2 = vector.broadcast %cst : f32 to vector<8x8xf32>
    %3 = arith.mulf %1, %2 : vector<8x8xf32>
    %c0_2 = arith.constant 0 : index
    %c0_3 = arith.constant 0 : index
    %c0_4 = arith.constant 0 : index
    %4 = vector.load %arg3[%c0_2, %c0_3, %c0_4] : memref<1x8x32xf32, #tpu.memory_space<vmem>>, vector<1x8x8xf32>
    %5 = vector.shape_cast %4 : vector<1x8x8xf32> to vector<8x8xf32>
    %c0_5 = arith.constant 0 : index
    %c0_6 = arith.constant 0 : index
    %c0_7 = arith.constant 0 : index
    %6 = vector.load %arg4[%c0_5, %c0_6, %c0_7] : memref<1x8x32xf32, #tpu.memory_space<vmem>>, vector<1x8x8xf32>
    %7 = vector.shape_cast %6 : vector<1x8x8xf32> to vector<8x8xf32>
    %cst_8 = arith.constant dense<0.000000e+00> : vector<8x8xf32>
    %8 = tpu.matmul %3, %5, %cst_8 {dimension_numbers = #tpu.dot_dimension_numbers<[1], [1], [0], [0], [0, 0, 1, 0], [], []>} : vector<8x8xf32>, vector<8x8xf32>, vector<8x8xf32> -> vector<8x8xf32>
    %cst_9 = arith.constant dense<0xFF800000> : vector<8xf32>
    %9 = vector.multi_reduction <maximumf>, %8, %cst_9 [1] : vector<8x8xf32> to vector<8xf32>
    %10 = vector.shape_cast %9 : vector<8xf32> to vector<8x1xf32>
    %11 = vector.broadcast %10 : vector<8x1xf32> to vector<8x8xf32>
    %12 = arith.subf %8, %11 : vector<8x8xf32>
    %13 = math.exp %12 : vector<8x8xf32>
    %cst_10 = arith.constant dense<0.000000e+00> : vector<8xf32>
    %14 = vector.multi_reduction <add>, %13, %cst_10 [1] : vector<8x8xf32> to vector<8xf32>
    %15 = vector.shape_cast %14 : vector<8xf32> to vector<8x1xf32>
    %16 = tpu.reciprocal %15 : vector<8x1xf32> -> vector<8x1xf32>
    %17 = vector.broadcast %16 : vector<8x1xf32> to vector<8x8xf32>
    %18 = arith.mulf %13, %17 : vector<8x8xf32>
    %c0_11 = arith.constant 0 : index
    %c0_12 = arith.constant 0 : index
    %c0_13 = arith.constant 0 : index
    %c0_14 = arith.constant 0 : index
    %19 = vector.load %arg5[%c0_11, %c0_12, %c0_13, %c0_14] : memref<1x4x8x8xf32, #tpu.memory_space<vmem>>, vector<1x1x8x8xf32>
    %20 = vector.shape_cast %19 : vector<1x1x8x8xf32> to vector<8x8xf32>
    %21 = vector.shape_cast %18 : vector<8x8xf32> to vector<1x1x8x8xf32>
    tpu.vector_store %arg5[%c0_11, %c0_12, %c0_13, %c0_14], %21 {strides = array<i32>} : memref<1x4x8x8xf32, #tpu.memory_space<vmem>>, vector<1x1x8x8xf32>,
    %cst_15 = arith.constant dense<0.000000e+00> : vector<8x8xf32>
    %22 = tpu.matmul %18, %7, %cst_15 {dimension_numbers = #tpu.dot_dimension_numbers<[1], [0], [0], [1], [0, 0, 1, 1], [], []>} : vector<8x8xf32>, vector<8x8xf32>, vector<8x8xf32> -> vector<8x8xf32>
    %c0_16 = arith.constant 0 : index
    %c0_17 = arith.constant 0 : index
    %23 = vector.load %arg7[%c0_16, %c0_17] : memref<8x32xf32, #tpu.memory_space<vmem>>, vector<8x8xf32>
    tpu.vector_store %arg7[%c0_16, %c0_17], %22 {strides = array<i32>} : memref<8x32xf32, #tpu.memory_space<vmem>>, vector<8x8xf32>,
    %c0_18 = arith.constant 0 : index
    %c0_19 = arith.constant 0 : index
    %c8 = arith.constant 8 : index
    %24 = vector.load %arg2[%c0_18, %c0_19, %c8] : memref<1x8x32xf32, #tpu.memory_space<vmem>>, vector<1x8x8xf32>
    %25 = vector.shape_cast %24 : vector<1x8x8xf32> to vector<8x8xf32>
    %cst_20 = arith.constant 0.353553385 : f32
    %26 = vector.broadcast %cst_20 : f32 to vector<8x8xf32>
    %27 = arith.mulf %25, %26 : vector<8x8xf32>
    %c0_21 = arith.constant 0 : index
    %c0_22 = arith.constant 0 : index
    %c8_23 = arith.constant 8 : index
    %28 = vector.load %arg3[%c0_21, %c0_22, %c8_23] : memref<1x8x32xf32, #tpu.memory_space<vmem>>, vector<1x8x8xf32>
    %29 = vector.shape_cast %28 : vector<1x8x8xf32> to vector<8x8xf32>
    %c0_24 = arith.constant 0 : index
    %c0_25 = arith.constant 0 : index
    %c8_26 = arith.constant 8 : index
    %30 = vector.load %arg4[%c0_24, %c0_25, %c8_26] : memref<1x8x32xf32, #tpu.memory_space<vmem>>, vector<1x8x8xf32>
    %31 = vector.shape_cast %30 : vector<1x8x8xf32> to vector<8x8xf32>
    %cst_27 = arith.constant dense<0.000000e+00> : vector<8x8xf32>
    %32 = tpu.matmul %27, %29, %cst_27 {dimension_numbers = #tpu.dot_dimension_numbers<[1], [1], [0], [0], [0, 0, 1, 0], [], []>} : vector<8x8xf32>, vector<8x8xf32>, vector<8x8xf32> -> vector<8x8xf32>
    %cst_28 = arith.constant dense<0xFF800000> : vector<8xf32>
    %33 = vector.multi_reduction <maximumf>, %32, %cst_28 [1] : vector<8x8xf32> to vector<8xf32>
    %34 = vector.shape_cast %33 : vector<8xf32> to vector<8x1xf32>
    %35 = vector.broadcast %34 : vector<8x1xf32> to vector<8x8xf32>
    %36 = arith.subf %32, %35 : vector<8x8xf32>
    %37 = math.exp %36 : vector<8x8xf32>
    %cst_29 = arith.constant dense<0.000000e+00> : vector<8xf32>
    %38 = vector.multi_reduction <add>, %37, %cst_29 [1] : vector<8x8xf32> to vector<8xf32>
    %39 = vector.shape_cast %38 : vector<8xf32> to vector<8x1xf32>
    %40 = tpu.reciprocal %39 : vector<8x1xf32> -> vector<8x1xf32>
    %41 = vector.broadcast %40 : vector<8x1xf32> to vector<8x8xf32>
    %42 = arith.mulf %37, %41 : vector<8x8xf32>
    %c0_30 = arith.constant 0 : index
    %c1 = arith.constant 1 : index
    %c0_31 = arith.constant 0 : index
    %c0_32 = arith.constant 0 : index
    %43 = vector.load %arg5[%c0_30, %c1, %c0_31, %c0_32] : memref<1x4x8x8xf32, #tpu.memory_space<vmem>>, vector<1x1x8x8xf32>
    %44 = vector.shape_cast %43 : vector<1x1x8x8xf32> to vector<8x8xf32>
    %45 = vector.shape_cast %42 : vector<8x8xf32> to vector<1x1x8x8xf32>
    tpu.vector_store %arg5[%c0_30, %c1, %c0_31, %c0_32], %45 {strides = array<i32>} : memref<1x4x8x8xf32, #tpu.memory_space<vmem>>, vector<1x1x8x8xf32>,
    %cst_33 = arith.constant dense<0.000000e+00> : vector<8x8xf32>
    %46 = tpu.matmul %42, %31, %cst_33 {dimension_numbers = #tpu.dot_dimension_numbers<[1], [0], [0], [1], [0, 0, 1, 1], [], []>} : vector<8x8xf32>, vector<8x8xf32>, vector<8x8xf32> -> vector<8x8xf32>
    %c0_34 = arith.constant 0 : index
    %c8_35 = arith.constant 8 : index
    %47 = vector.load %arg7[%c0_34, %c8_35] : memref<8x32xf32, #tpu.memory_space<vmem>>, vector<8x8xf32>
    tpu.vector_store %arg7[%c0_34, %c8_35], %46 {strides = array<i32>} : memref<8x32xf32, #tpu.memory_space<vmem>>, vector<8x8xf32>,
    %c0_36 = arith.constant 0 : index
    %c0_37 = arith.constant 0 : index
    %c16 = arith.constant 16 : index
    %48 = vector.load %arg2[%c0_36, %c0_37, %c16] : memref<1x8x32xf32, #tpu.memory_space<vmem>>, vector<1x8x8xf32>
    %49 = vector.shape_cast %48 : vector<1x8x8xf32> to vector<8x8xf32>
    %cst_38 = arith.constant 0.353553385 : f32
    %50 = vector.broadcast %cst_38 : f32 to vector<8x8xf32>
    %51 = arith.mulf %49, %50 : vector<8x8xf32>
    %c0_39 = arith.constant 0 : index
    %c0_40 = arith.constant 0 : index
    %c16_41 = arith.constant 16 : index
    %52 = vector.load %arg3[%c0_39, %c0_40, %c16_41] : memref<1x8x32xf32, #tpu.memory_space<vmem>>, vector<1x8x8xf32>
    %53 = vector.shape_cast %52 : vector<1x8x8xf32> to vector<8x8xf32>
    %c0_42 = arith.constant 0 : index
    %c0_43 = arith.constant 0 : index
    %c16_44 = arith.constant 16 : index
    %54 = vector.load %arg4[%c0_42, %c0_43, %c16_44] : memref<1x8x32xf32, #tpu.memory_space<vmem>>, vector<1x8x8xf32>
    %55 = vector.shape_cast %54 : vector<1x8x8xf32> to vector<8x8xf32>
    %cst_45 = arith.constant dense<0.000000e+00> : vector<8x8xf32>
    %56 = tpu.matmul %51, %53, %cst_45 {dimension_numbers = #tpu.dot_dimension_numbers<[1], [1], [0], [0], [0, 0, 1, 0], [], []>} : vector<8x8xf32>, vector<8x8xf32>, vector<8x8xf32> -> vector<8x8xf32>
    %cst_46 = arith.constant dense<0xFF800000> : vector<8xf32>
    %57 = vector.multi_reduction <maximumf>, %56, %cst_46 [1] : vector<8x8xf32> to vector<8xf32>
    %58 = vector.shape_cast %57 : vector<8xf32> to vector<8x1xf32>
    %59 = vector.broadcast %58 : vector<8x1xf32> to vector<8x8xf32>
    %60 = arith.subf %56, %59 : vector<8x8xf32>
    %61 = math.exp %60 : vector<8x8xf32>
    %cst_47 = arith.constant dense<0.000000e+00> : vector<8xf32>
    %62 = vector.multi_reduction <add>, %61, %cst_47 [1] : vector<8x8xf32> to vector<8xf32>
    %63 = vector.shape_cast %62 : vector<8xf32> to vector<8x1xf32>
    %64 = tpu.reciprocal %63 : vector<8x1xf32> -> vector<8x1xf32>
    %65 = vector.broadcast %64 : vector<8x1xf32> to vector<8x8xf32>
    %66 = arith.mulf %61, %65 : vector<8x8xf32>
    %c0_48 = arith.constant 0 : index
    %c2 = arith.constant 2 : index
    %c0_49 = arith.constant 0 : index
    %c0_50 = arith.constant 0 : index
    %67 = vector.load %arg5[%c0_48, %c2, %c0_49, %c0_50] : memref<1x4x8x8xf32, #tpu.memory_space<vmem>>, vector<1x1x8x8xf32>
    %68 = vector.shape_cast %67 : vector<1x1x8x8xf32> to vector<8x8xf32>
    %69 = vector.shape_cast %66 : vector<8x8xf32> to vector<1x1x8x8xf32>
    tpu.vector_store %arg5[%c0_48, %c2, %c0_49, %c0_50], %69 {strides = array<i32>} : memref<1x4x8x8xf32, #tpu.memory_space<vmem>>, vector<1x1x8x8xf32>,
    %cst_51 = arith.constant dense<0.000000e+00> : vector<8x8xf32>
    %70 = tpu.matmul %66, %55, %cst_51 {dimension_numbers = #tpu.dot_dimension_numbers<[1], [0], [0], [1], [0, 0, 1, 1], [], []>} : vector<8x8xf32>, vector<8x8xf32>, vector<8x8xf32> -> vector<8x8xf32>
    %c0_52 = arith.constant 0 : index
    %c16_53 = arith.constant 16 : index
    %71 = vector.load %arg7[%c0_52, %c16_53] : memref<8x32xf32, #tpu.memory_space<vmem>>, vector<8x8xf32>
    tpu.vector_store %arg7[%c0_52, %c16_53], %70 {strides = array<i32>} : memref<8x32xf32, #tpu.memory_space<vmem>>, vector<8x8xf32>,
    %c0_54 = arith.constant 0 : index
    %c0_55 = arith.constant 0 : index
    %c24 = arith.constant 24 : index
    %72 = vector.load %arg2[%c0_54, %c0_55, %c24] : memref<1x8x32xf32, #tpu.memory_space<vmem>>, vector<1x8x8xf32>
    %73 = vector.shape_cast %72 : vector<1x8x8xf32> to vector<8x8xf32>
    %cst_56 = arith.constant 0.353553385 : f32
    %74 = vector.broadcast %cst_56 : f32 to vector<8x8xf32>
    %75 = arith.mulf %73, %74 : vector<8x8xf32>
    %c0_57 = arith.constant 0 : index
    %c0_58 = arith.constant 0 : index
    %c24_59 = arith.constant 24 : index
    %76 = vector.load %arg3[%c0_57, %c0_58, %c24_59] : memref<1x8x32xf32, #tpu.memory_space<vmem>>, vector<1x8x8xf32>
    %77 = vector.shape_cast %76 : vector<1x8x8xf32> to vector<8x8xf32>
    %c0_60 = arith.constant 0 : index
    %c0_61 = arith.constant 0 : index
    %c24_62 = arith.constant 24 : index
    %78 = vector.load %arg4[%c0_60, %c0_61, %c24_62] : memref<1x8x32xf32, #tpu.memory_space<vmem>>, vector<1x8x8xf32>
    %79 = vector.shape_cast %78 : vector<1x8x8xf32> to vector<8x8xf32>
    %cst_63 = arith.constant dense<0.000000e+00> : vector<8x8xf32>
    %80 = tpu.matmul %75, %77, %cst_63 {dimension_numbers = #tpu.dot_dimension_numbers<[1], [1], [0], [0], [0, 0, 1, 0], [], []>} : vector<8x8xf32>, vector<8x8xf32>, vector<8x8xf32> -> vector<8x8xf32>
    %cst_64 = arith.constant dense<0xFF800000> : vector<8xf32>
    %81 = vector.multi_reduction <maximumf>, %80, %cst_64 [1] : vector<8x8xf32> to vector<8xf32>
    %82 = vector.shape_cast %81 : vector<8xf32> to vector<8x1xf32>
    %83 = vector.broadcast %82 : vector<8x1xf32> to vector<8x8xf32>
    %84 = arith.subf %80, %83 : vector<8x8xf32>
    %85 = math.exp %84 : vector<8x8xf32>
    %cst_65 = arith.constant dense<0.000000e+00> : vector<8xf32>
    %86 = vector.multi_reduction <add>, %85, %cst_65 [1] : vector<8x8xf32> to vector<8xf32>
    %87 = vector.shape_cast %86 : vector<8xf32> to vector<8x1xf32>
    %88 = tpu.reciprocal %87 : vector<8x1xf32> -> vector<8x1xf32>
    %89 = vector.broadcast %88 : vector<8x1xf32> to vector<8x8xf32>
    %90 = arith.mulf %85, %89 : vector<8x8xf32>
    %c0_66 = arith.constant 0 : index
    %c3 = arith.constant 3 : index
    %c0_67 = arith.constant 0 : index
    %c0_68 = arith.constant 0 : index
    %91 = vector.load %arg5[%c0_66, %c3, %c0_67, %c0_68] : memref<1x4x8x8xf32, #tpu.memory_space<vmem>>, vector<1x1x8x8xf32>
    %92 = vector.shape_cast %91 : vector<1x1x8x8xf32> to vector<8x8xf32>
    %93 = vector.shape_cast %90 : vector<8x8xf32> to vector<1x1x8x8xf32>
    tpu.vector_store %arg5[%c0_66, %c3, %c0_67, %c0_68], %93 {strides = array<i32>} : memref<1x4x8x8xf32, #tpu.memory_space<vmem>>, vector<1x1x8x8xf32>,
    %cst_69 = arith.constant dense<0.000000e+00> : vector<8x8xf32>
    %94 = tpu.matmul %90, %79, %cst_69 {dimension_numbers = #tpu.dot_dimension_numbers<[1], [0], [0], [1], [0, 0, 1, 1], [], []>} : vector<8x8xf32>, vector<8x8xf32>, vector<8x8xf32> -> vector<8x8xf32>
    %c0_70 = arith.constant 0 : index
    %c24_71 = arith.constant 24 : index
    %95 = vector.load %arg7[%c0_70, %c24_71] : memref<8x32xf32, #tpu.memory_space<vmem>>, vector<8x8xf32>
    tpu.vector_store %arg7[%c0_70, %c24_71], %94 {strides = array<i32>} : memref<8x32xf32, #tpu.memory_space<vmem>>, vector<8x8xf32>,
    %c0_72 = arith.constant 0 : index
    %c0_73 = arith.constant 0 : index
    %96 = vector.load %arg7[%c0_72, %c0_73] : memref<8x32xf32, #tpu.memory_space<vmem>>, vector<8x32xf32>
    %c0_74 = arith.constant 0 : index
    %c0_75 = arith.constant 0 : index
    %c0_76 = arith.constant 0 : index
    %97 = vector.load %arg6[%c0_74, %c0_75, %c0_76] : memref<1x8x32xf32, #tpu.memory_space<vmem>>, vector<1x8x32xf32>
    %98 = vector.shape_cast %97 : vector<1x8x32xf32> to vector<8x32xf32>
    %99 = vector.shape_cast %96 : vector<8x32xf32> to vector<1x8x32xf32>
    tpu.vector_store %arg6[%c0_74, %c0_75, %c0_76], %99 {strides = array<i32>} : memref<1x8x32xf32, #tpu.memory_space<vmem>>, vector<1x8x32xf32>,
    return
  }
  func.func @transform_0(%arg0: i32, %arg1: i32) -> (i32, i32, i32) {
    %c0_i32 = arith.constant 0 : i32
    %c0_i32_0 = arith.constant 0 : i32
    return %arg0, %arg1, %c0_i32 : i32, i32, i32
  }
  func.func @transform_1(%arg0: i32, %arg1: i32) -> (i32, i32, i32) {
    %c0_i32 = arith.constant 0 : i32
    %c0_i32_0 = arith.constant 0 : i32
    %c0_i32_1 = arith.constant 0 : i32
    return %arg0, %c0_i32, %c0_i32_0 : i32, i32, i32
  }
  func.func @transform_2(%arg0: i32, %arg1: i32) -> (i32, i32, i32) {
    %c0_i32 = arith.constant 0 : i32
    %c0_i32_0 = arith.constant 0 : i32
    %c0_i32_1 = arith.constant 0 : i32
    return %arg0, %c0_i32, %c0_i32_0 : i32, i32, i32
  }
  func.func @transform_3(%arg0: i32, %arg1: i32) -> (i32, i32, i32, i32) {
    %c0_i32 = arith.constant 0 : i32
    %c0_i32_0 = arith.constant 0 : i32
    %c0_i32_1 = arith.constant 0 : i32
    return %arg0, %c0_i32, %arg1, %c0_i32_0 : i32, i32, i32, i32
  }
  func.func @transform_4(%arg0: i32, %arg1: i32) -> (i32, i32, i32) {
    %c0_i32 = arith.constant 0 : i32
    %c0_i32_0 = arith.constant 0 : i32
    return %arg0, %arg1, %c0_i32 : i32, i32, i32
  }
}

</mosaic_0001>

<bundles_post_ra>
// kernel: tpu_custom_call.1
= control target key start
LH: loop header
LB: loop body
LE: loop exit
PB: predicated region body
PF: predicated region fallthrough
CT: control target
= control target key end

     0   :  { %10 = vsyncpa [#allocation4], 0  ;;  %s1971_s0 = inlined_call_operand.hbm [shape: f32[2,8,32], index: 0, kind: input, shape index: {}]   ;;  %s1972_s1 = inlined_call_operand.hbm [shape: f32[2,8,32], index: 1, kind: input, shape index: {}]   ;;  %s1973_s2 = inlined_call_operand.hbm [shape: f32[2,8,32], index: 2, kind: input, shape index: {}]   ;;  %s1974_s3 = inlined_call_operand.hbm [shape: f32[2,4,8,8], index: 3, kind: output, shape index: {0}]   ;;  %s1975_s4 = inlined_call_operand.hbm [shape: f32[2,8,32], index: 4, kind: output, shape index: {1}]  }
   0x1   :  { %12 = vsyncpa [#allocation4 + $0x1], 0 }
   0x2   :  { %13 = vsyncpa [#allocation7], 0 }
   0x3   :  { %14 = vsyncpa [#allocation5], 0 }
   0x4   :  { %16 = vsyncpa [#allocation5 + $0x1], 0 }
   0x5   :  { %17 = vsyncpa [#allocation11], 0 }
   0x6   :  { %19 = vsyncpa [#allocation11 + $0x1], 0  ;;  %s1611_s15 = smov 0   ;;  %s1613_s16 = smov 0  }
   0x7   :  { %s1615_s17 = smov 0   ;;  %s1617_s18 = smov 0  }
   0x8   :  { %s1619_s19 = smov 0   ;;  %s1621_s20 = smov 0  }
   0x9 LB: > { %s1166_s21 = sadd.s32 4294967295, %s1570_s20   ;;  %s1167_s22 = sadd.s32 4294967294, %s1570_s20   ;;  %s1570_s20 = sphi %s1621_s20, %s25_s20   ;;  %s1566_s19 = sphi %s1619_s19, %s1995_s19   ;;  %s1562_s18 = sphi %s1617_s18, %s1994_s18   ;;  %s1558_s17 = sphi %s1615_s17, %s1993_s17   ;;  %s1554_s16 = sphi %s1613_s16, %s1992_s16   ;;  %s1550_s15 = sphi %s1611_s15, %s1991_s15  }
   0xa   : > { %p59_p0 = scmp.ne.s32.totalorder %s1554_s16, %s1550_s15  ;;  %p60_p1 = scmp.eq.s32.totalorder %s1166_s21, 0 }
   0xb   : > { %p1645_p2 = scmp.eq.s32.totalorder %s1166_s21, 1  ;;  %p143_p3 = scmp.eq.s32.totalorder %s1167_s22, 1 }
   0xc   : > { %p1649_p4 = por %p60_p1, %p59_p0  ;;  %p1168_p5 = scmp.ge.s32.totalorder %s1570_s20, 1 }
   0xd   : > { %s1979_s23 = scalar_select %p1645_p2, 1, 0 }
   0xe   : > { %s1980_s24 = scalar_select %p1649_p4, 1, 0 }
   0xf   : > { %p1654_p6 = por %p143_p3, %p59_p0  ;;  %p178_p7 = scmp.lt.s32.totalorder %s1570_s20, 3 }
  0x10   : > { %s1660_s26 = sshll.u32 %s1562_s18, 7  ;;  %s1572_s5 = smov [#allocation6]  }
  0x11   : > { %s1981_s25 = scalar_select %p1654_p6, 1, 0 }
  0x12   : > { %p1662_p8 = pnand %p1168_p5, %p178_p7  ;;  %s1670_s30 = scalar_lea.hbm %s1972_s1, %s1660_s26 }
  0x13   : > { %s193_s6 = sshll.u32 %s1572_s5, 4  ;;  %s1679_s9 = scalar_lea.hbm %s1973_s2, %s1660_s26  ;;  %s194_s6 = int_to_ptr.vmem [resolvable:$true] %s193_s6 }
  0x14   : > { %s1982_s27 = scalar_select %p1662_p8, 1, 0 }
  0x15   : > { %p1267_p10 = pneg %p1662_p8  ;;  %s1573_s11 = smov [#allocation8]  }
  0x16   : > { %s206_s12 = sshll.u32 %s1573_s11, 4  ;;  %s1362_s13 = scalar_lea.hbm %s1670_s30, 128  ;;  %s1687_s12 = int_to_ptr.vmem [resolvable:$true] %s206_s12 }
  0x17   : > { %p1683_p11 = pnand %p1267_p10, %p1649_p4  ;;  %p1363_p12 = scmp.ne.s32.totalorder %s1670_s30, %s1362_s13 }
  0x18   : > { %s1367_s22 = scalar_lea.hbm %s1972_s1, 256  ;;  %p1368_p3 = scmp.lt.u32.totalorder %s1670_s30, %s1972_s1 }
  0x19   : > { %p1364_p13 = pneg %p1683_p11  ;;  %p1369_p5 = scmp.lt.u32.totalorder %s1367_s22, %s1362_s13 }
  0x1a   : > { %p1371_p10 = scmp.lt.u32.totalorder %s1362_s13, %s1670_s30 }
  0x1b   : > { %p1365_p0 = pnand %p1364_p13, %p1363_p12  ;;  %p1370_p7 = por %p1369_p5, %p1368_p3 }
  0x1d   : > { %p1366_p1 = pneg %p1365_p0  ;;  %p1372_p9 = por %p1371_p10, %p1370_p7 }
  0x1f   : > { %p1373_p6 = pnand %p1372_p9, %p1366_p1 }
  0x21   : > { %1376 = shalt.err (!%p1373_p6)
}
  0x22   : > { %s1377_s5 = scalar_lea.vmem %s194_s6, 128  ;;  %p1385_p8 = scmp.lt.s32.totalorder %s194_s6, %s194_s6 }
  0x23   : > { %p1378_p4 = scmp.ne.s32.totalorder %s194_s6, %s1377_s5  ;;  %p1386_p2 = scmp.lt.s32.totalorder %s1377_s5, %s1377_s5 }
  0x25   : > { %p1380_p12 = pnand %p1378_p4, %p1364_p13  ;;  %p1387_p3 = por %p1386_p2, %p1385_p8 }
  0x27   : > { %p1381_p0 = pneg %p1380_p12 }
  0x29   : > { %p1388_p5 = pnand %p1387_p3, %p1381_p0 }
  0x2b   : > { %1391 = shalt.err (!%p1388_p5)
}
  0x2c   : > { %1270 = dma.hbm_to_vmem [thread:$0]  (!%p1683_p11), %s1670_s30, 128, %s194_s6, [#allocation7]  }
  0x2d   : > { %s1392_s7 = scalar_lea.hbm %s1679_s9, 128  ;;  %s1397_s13 = scalar_lea.hbm %s1973_s2, 256 }
  0x2e   : > { %p1393_p6 = scmp.ne.s32.totalorder %s1679_s9, %s1392_s7  ;;  %p1398_p2 = scmp.lt.u32.totalorder %s1679_s9, %s1973_s2 }
  0x2f   : > { %p1399_p8 = scmp.lt.u32.totalorder %s1397_s13, %s1392_s7  ;;  %p1401_p7 = scmp.lt.u32.totalorder %s1392_s7, %s1679_s9 }
  0x30   : > { %p1395_p4 = pnand %p1393_p6, %p1364_p13 }
  0x31   : > { %p1400_p1 = por %p1399_p8, %p1398_p2 }
  0x32   : > { %p1396_p9 = pneg %p1395_p4 }
  0x33   : > { %p1402_p10 = por %p1401_p7, %p1400_p1 }
  0x35   : > { %p1403_p12 = pnand %p1402_p10, %p1396_p9 }
  0x37   : > { %1406 = shalt.err (!%p1403_p12)
}
  0x38   : > { %s1407_s30 = scalar_lea.vmem %s1687_s12, 128  ;;  %p1415_p6 = scmp.lt.s32.totalorder %s1687_s12, %s1687_s12 }
  0x39   : > { %p1408_p0 = scmp.ne.s32.totalorder %s1687_s12, %s1407_s30  ;;  %p1416_p4 = scmp.lt.s32.totalorder %s1407_s30, %s1407_s30 }
  0x3b   : > { %p1410_p3 = pnand %p1408_p0, %p1364_p13  ;;  %p1417_p2 = por %p1416_p4, %p1415_p6 }
  0x3d   : > { %p1411_p5 = pneg %p1410_p3 }
  0x3f   : > { %p1418_p8 = pnand %p1417_p2, %p1411_p5 }
  0x41   : > { %1421 = shalt.err (!%p1418_p8)
}
  0x42   : > { %1273 = dma.hbm_to_vmem [thread:$0]  (!%p1683_p11), %s1679_s9, 128, %s1687_s12, [#allocation7]  }
  0x43   : > { %s37_s6 = sadd.s32 1, %s1566_s19  ;;  %s46_s22 = sadd.s32 1, %s1558_s17 }
  0x44   : > { %p39_p13 = scmp.ge.s32.totalorder %s37_s6, 2  ;;  %p53_p9 = scmp.ne.s32.totalorder %s1558_s17, %s1554_s16 }
  0x45   : > { %p54_p1 = scmp.eq.s32.totalorder %s1570_s20, 0  ;;  %p1285_p7 = scmp.lt.s32.totalorder %s1570_s20, 2 }
  0x46   : > { %s1997_s6 = smov (%p39_p13, %s37_s6), 0  ;;  %p1984_p12 = scmp.ne.s32.totalorder %s1979_s23, 0 }
  0x47   : > { %p55_p10 = por %p54_p1, %p53_p9  ;;  %s41_s28 = ssub.s32 %s1566_s19, %s1997_s6 }
  0x48   : > { %p1744_p0 = por %p1984_p12, %p53_p9  ;;  %s217_s29 = sand.u32 1, %s1558_s17  }
  0x49   : > { %p44_p3 = scmp.eq.s32.totalorder %s41_s28, 0  ;;  %s1172_s9 = sshll.u32 %s217_s29, 3 }
  0x4a   : > { %s1173_s12 = sshll.u32 %s1566_s19, 7  ;;  %s221_s23 = scalar_lea.vmem [#allocation3], %s1172_s9 }
  0x4b   : > { %s1753_s5 = scalar_select %p44_p3, %s1558_s17, %s46_s22  }
  0x4c   : > { %s1758_s11 = scalar_lea.hbm %s1971_s0, %s1173_s12  ;;  %s229_s13 = sshll.u32 %s221_s23, 4  ;;  %s1766_s13 = int_to_ptr.vmem [resolvable:$true] %s229_s13 }
  0x4d   : > { %p1762_p11 = pnand %p1285_p7, %p55_p10  ;;  %s218_s21 = scalar_lea.sflag [#allocation4], %s217_s29 }
  0x4e   : > { %s1422_s30 = scalar_lea.hbm %s1758_s11, 128  ;;  %s1427_s9 = scalar_lea.hbm %s1971_s0, 256 }
  0x4f   : > { %p1423_p5 = scmp.ne.s32.totalorder %s1758_s11, %s1422_s30  ;;  %p1424_p6 = pneg %p1762_p11 }
  0x50   : > { %p1428_p8 = scmp.lt.u32.totalorder %s1758_s11, %s1971_s0  ;;  %p1429_p13 = scmp.lt.u32.totalorder %s1427_s9, %s1422_s30 }
  0x51   : > { %p1425_p4 = pnand %p1424_p6, %p1423_p5  ;;  %p1431_p1 = scmp.lt.u32.totalorder %s1422_s30, %s1758_s11 }
  0x52   : > { %p1430_p9 = por %p1429_p13, %p1428_p8 }
  0x53   : > { %p1426_p2 = pneg %p1425_p4 }
  0x54   : > { %p1432_p7 = por %p1431_p1, %p1430_p9 }
  0x56   : > { %p1433_p10 = pnand %p1432_p7, %p1426_p2 }
  0x58   : > { %1436 = shalt.err (!%p1433_p10)
}
  0x59   : > { %s1437_s29 = scalar_lea.vmem %s1766_s13, 128  ;;  %s1574_s8 = smov [#allocation3]  }
  0x5a   : > { %p1438_p12 = scmp.ne.s32.totalorder %s1766_s13, %s1437_s29  ;;  %s1442_s23 = sshll.u32 %s1574_s8, 4  ;;  %s1443_s23 = int_to_ptr.vmem [resolvable:$false] %s1442_s23 }
  0x5b   : > { %s1444_s22 = scalar_lea.vmem %s1443_s23, 256  ;;  %p1445_p4 = scmp.lt.s32.totalorder %s1766_s13, %s1443_s23 }
  0x5c   : > { %p1440_p3 = pnand %p1438_p12, %p1424_p6  ;;  %p1446_p8 = scmp.lt.s32.totalorder %s1444_s22, %s1437_s29 }
  0x5e   : > { %p1441_p5 = pneg %p1440_p3  ;;  %p1447_p13 = por %p1446_p8, %p1445_p4 }
  0x60   : > { %p1448_p9 = pnand %p1447_p13, %p1441_p5 }
  0x62   : > { %1451 = shalt.err (!%p1448_p9)
}
  0x63   : > { %1277 = dma.hbm_to_vmem [thread:$0]  (!%p1762_p11), %s1758_s11, 128, %s1766_s13, %s218_s21  }
  0x64   : > { %p1987_p2 = scmp.ne.s32.totalorder %s1982_s27, 0 }
  0x65   : > { %s1796_s30 = sand.u32 (!%p1987_p2), 1, %s1554_s16   ;;  %p1988_p6 = scmp.ne.s32.totalorder (!%p1987_p2), %s1980_s24, 0 }
  0x66   : > { %238 = sbr.rel (%p1987_p2) target bundleno = 1576 (0x628), region = 32  ;;  %s1175_s28 = sshll.u32 (!%p1987_p2), %s1796_s30, 3 }
  0x67   : > { %s241_s9 = scalar_lea.sflag (!%p1987_p2), [#allocation4], %s1796_s30  ;;  %s244_s12 = scalar_lea.vmem (!%p1987_p2), [#allocation3], %s1175_s28 }
  0x6d   : > { %1533 = dma.done.wait (%p1988_p6), %s241_s9, 128  }
  0x6e   : > { %1535 = vsyncadd (%p1988_p6), %s241_s9, 4294967168 }
  0x6f   : > { %1537 = dma.done.wait (%p1988_p6), [#allocation7], 256  }
  0x70   : > { %1539 = vsyncadd (%p1988_p6), [#allocation7], 4294967040  ;;  %v1575_v0 = vmov 0.0   ;;  %vm1576_vm0 = vmmov 0   ;;  %vm286_vm1 = vcmask 64512   ;;  %v284_v1 = vld [vmem:[#allocation6] sm:$0xff] }
  0x71   : > { %1217 = vmatprep.subr.mxu0 %v1575_v0  ;;  %1219 = vmatprep.mubr.msk.f32.mxu0 %vm1576_vm0, %v1575_v0  ;;  %v282_v2 = vld [vmem:[%s244_s12] sm:$0xff]  ;;  %s1577_s24 = smov 120   ;;  %s1578_s27 = smov 112   ;;  %v1828_v12 = vld [vmem:[#allocation8] sm:$0xff] }
  0x72   : > { %1222 = vmatprep.subr.mxu1 %v1575_v0  ;;  %1224 = vmatprep.mubr.msk.f32.mxu1 %vm1576_vm0, %v1575_v0  ;;  %v283_v3 = vmul.f32 0.35355338, %v282_v2  ;;  %s1579_s11 = smov 104   ;;  %s1176_s13 = sshll.u32 %s1796_s30, 5 }
  0x73   : > { %1218 = vmatpush3.xpose.msk.msra.mxu0 %vm286_vm1, %v284_v1  ;;  %457 = vrot.lane.b32.xlu1 %v284_v1, %s1577_s24  ;;  %s1834_s14 = scalar_lea.vmem [#allocation9], %s1176_s13  ;;  %s1580_s21 = smov 8  }
  0x74   : > { %1232 = vmatprep.subr.mxu0 %v1575_v0  ;;  %1223 = vmatpush3.msra.mxu1 %v1828_v12  ;;  %s1581_s7 = smov 16   ;;  %s1200_s29 = sshll.u32 %s1562_s18, 9 }
  0x75   : > { %1227 = vmatprep.subr.mxu1 %v1575_v0  ;;  %s1886_s22 = scalar_lea.hbm %s1974_s3, %s1200_s29  ;;  %s1012_s9 = sshll.u32 %s1834_s14, 4  ;;  %s1889_s9 = int_to_ptr.vmem [resolvable:$true] %s1012_s9 }
  0x76   : > { %1220 = vmatmul.mubr.msk.f32.vlgmr.msra.gmra.mrb[0].mxu0 %vm286_vm1, %v283_v3  ;;  %s993_s12 = scalar_lea.sflag [#allocation5], %s1796_s30 }
  0x77   : > { %1234 = vmatprep.mubr.msk.f32.mxu0 %vm1576_vm0, %v1575_v0  ;;  %454 = vrot.lane.b32.xlu1 %v283_v3, %s1577_s24 }
  0x7b   : > { %634 = vrot.lane.b32.xlu1 %v283_v3, %s1578_s27 }
  0x7f   : > { %817 = vrot.lane.b32.xlu1 %v284_v1, %s1579_s11 }
  0x83   : > { %814 = vrot.lane.b32.xlu1 %v283_v3, %s1579_s11 }
  0xe5   : > { %v458_v13 = vpop.permute.xlu1 %457 }
  0xe9   : > { %v455_v15 = vpop.permute.xlu1 %454 }
  0xed   : > { %v635_v17 = vpop.permute.xlu1 %634 }
  0xf1   : > { %v818_v20 = vpop.permute.xlu1 %817 }
  0xf5   : > { %v815_v21 = vpop.permute.xlu1 %814 }
 0x149   : > { %v359_v4 = vpop.f32.mrb[0].mxu0 }
 0x14a   : > { %v1221_v5 = vpop.f32.mrb[1].mxu0  ;;  %v363_v6 = vsel %vm286_vm1, %v359_v4, -inf }
 0x14b   : > { %364 = vmax.xlane.f32.xlu0 %v363_v6 }
 0x1d8   : > { %v365_v7 = vpop.xlane.xlu0 %364 }
 0x1d9   : > { %v366_v8 = vsub.f32 %v359_v4, %v365_v7 }
 0x1db   : > { %v367_v9 = vmul.f32 1.442695, %v366_v8 }
 0x1dd   : > { %1346 = vpow2.f32 %v367_v9 }
 0x1e7   : > { %v1347_v10 = vpop.eup %1346 }
 0x1e8   : > { %v369_v11 = vsel %vm286_vm1, %v1347_v10, 0.0 }
 0x1e9   : > { %370 = vadd.xlane.f32.xlu0 %v369_v11 }
 0x1ff   : > { %637 = vrot.lane.b32.xlu0 %v284_v1, %s1578_s27 }
 0x276   : > { %v371_v14 = vpop.xlane.xlu0 %370 }
 0x277   : > { %1348 = vrcp.f32 %v371_v14 }
 0x27a   : > { %v638_v19 = vpop.permute.xlu0 %637 }
 0x281   : > { %v1349_v16 = vpop.eup %1348 }
 0x282   : > { %v373_v18 = vmul.f32 %v1349_v16, %v1347_v10 }
 0x284   : > { %374 = vst.msk [vmem:[%s1834_s14] sm:$0xff] %vm286_vm1, %v373_v18  ;;  %1225 = vmatmul.mubr.msk.f32.vlgmr.msra.gmra.mrb[0].mxu1 %vm286_vm1, %v373_v18 }
 0x285   : > { %1228 = vmatpush3.xpose.msk.msra.mxu1 %vm286_vm1, %v458_v13  ;;  %1229 = vmatprep.mubr.msk.f32.mxu1 %vm1576_vm0, %v1575_v0 }
 0x286   : > { %1237 = vmatprep.subr.mxu1 %v1575_v0 }
 0x288   : > { %1230 = vmatmul.mubr.msk.f32.vlgmr.msra.gmra.mrb[2].mxu1 %vm286_vm1, %v455_v15 }
 0x289   : > { %1238 = vmatpush3.xpose.msk.msra.mxu1 %vm286_vm1, %v638_v19  ;;  %1239 = vmatprep.mubr.msk.f32.mxu1 %vm1576_vm0, %v1575_v0 }
 0x28a   : > { %1247 = vmatprep.subr.mxu1 %v1575_v0 }
 0x28c   : > { %1240 = vmatmul.mubr.msk.f32.vlgmr.msra.gmra.mrb[4].mxu1 %vm286_vm1, %v635_v17 }
 0x28d   : > { %1248 = vmatpush3.xpose.msk.msra.mxu1 %vm286_vm1, %v818_v20  ;;  %1249 = vmatprep.mubr.msk.f32.mxu1 %vm1576_vm0, %v1575_v0 }
 0x290   : > { %1250 = vmatmul.mubr.msk.f32.vlgmr.msra.gmra.mrb[6].mxu1 %vm286_vm1, %v815_v21 }
 0x357   : > { %v444_v22 = vpop.f32.mrb[0].mxu1 }
 0x358   : > { %448 = vst.msk [vmem:[#allocation2] sm:$0xff] %vm286_vm1, %v444_v22  ;;  %v1226_v23 = vpop.f32.mrb[1].mxu1 }
 0x35b   : > { %v529_v24 = vpop.f32.mrb[2].mxu1 }
 0x35c   : > { %v1231_v25 = vpop.f32.mrb[3].mxu1  ;;  %v533_v26 = vsel %vm286_vm1, %v529_v24, -inf }
 0x35d   : > { %534 = vmax.xlane.f32.xlu1 %v533_v26 }
 0x35f   : > { %v709_v27 = vpop.f32.mrb[4].mxu1 }
 0x360   : > { %v713_v28 = vsel %vm286_vm1, %v709_v27, -inf  ;;  %v1241_v29 = vpop.f32.mrb[5].mxu1 }
 0x361   : > { %714 = vmax.xlane.f32.xlu0 %v713_v28 }
 0x363   : > { %v889_v30 = vpop.f32.mrb[6].mxu1 }
 0x364   : > { %v893_v31 = vsel %vm286_vm1, %v889_v30, -inf  ;;  %v1251_v32 = vpop.f32.mrb[7].mxu1 }
 0x365   : > { %894 = vmax.xlane.f32.xlu1 %v893_v31 }
 0x3ea   : > { %v535_v33 = vpop.xlane.xlu1 %534 }
 0x3eb   : > { %v536_v34 = vsub.f32 %v529_v24, %v535_v33 }
 0x3ed   : > { %v537_v35 = vmul.f32 1.442695, %v536_v34 }
 0x3ee   : > { %v715_v36 = vpop.xlane.xlu0 %714 }
 0x3ef   : > { %1350 = vpow2.f32 %v537_v35  ;;  %v716_v37 = vsub.f32 %v709_v27, %v715_v36 }
 0x3f1   : > { %v717_v38 = vmul.f32 1.442695, %v716_v37 }
 0x3f2   : > { %v895_v43 = vpop.xlane.xlu1 %894 }
 0x3f3   : > { %1352 = vpow2.f32 %v717_v38  ;;  %v896_v44 = vsub.f32 %v889_v30, %v895_v43 }
 0x3f5   : > { %v897_v45 = vmul.f32 1.442695, %v896_v44 }
 0x3f7   : > { %1354 = vpow2.f32 %v897_v45 }
 0x3f9   : > { %v1351_v39 = vpop.eup %1350 }
 0x3fa   : > { %v539_v40 = vsel %vm286_vm1, %v1351_v39, 0.0 }
 0x3fb   : > { %540 = vadd.xlane.f32.xlu1 %v539_v40 }
 0x3fd   : > { %v1353_v41 = vpop.eup %1352 }
 0x3fe   : > { %v719_v42 = vsel %vm286_vm1, %v1353_v41, 0.0 }
 0x3ff   : > { %720 = vadd.xlane.f32.xlu0 %v719_v42 }
 0x401   : > { %v1355_v46 = vpop.eup %1354 }
 0x402   : > { %v899_v47 = vsel %vm286_vm1, %v1355_v46, 0.0 }
 0x40c   : > { %727 = vrot.lane.b32.xlu1 %v1828_v12, %s1578_s27  ;;  %s1582_s27 = smov [#allocation9]  }
 0x415   : > { %547 = vrot.lane.b32.xlu0 %v1828_v12, %s1577_s24  ;;  %s1452_s24 = scalar_lea.vmem %s1889_s9, 512 }
 0x416   : > { %p1453_p11 = scmp.ne.s32.totalorder %s1889_s9, %s1452_s24 }
 0x418   : > { %p1454_p1 = pnand %p1453_p11, %p1744_p0 }
 0x41a   : > { %p1455_p7 = pneg %p1454_p1 }
 0x430   : > { %900 = vadd.xlane.f32.xlu1 %v899_v47 }
 0x441   : > { %907 = vrot.lane.b32.xlu1 %v1828_v12, %s1579_s11  ;;  %s1456_s11 = sshll.u32 %s1582_s27, 4  ;;  %s1457_s11 = int_to_ptr.vmem [resolvable:$false] %s1456_s11 }
 0x442   : > { %s1458_s18 = scalar_lea.vmem %s1457_s11, 1024  ;;  %p1459_p10 = scmp.lt.s32.totalorder %s1889_s9, %s1457_s11 }
 0x443   : > { %p1460_p12 = scmp.lt.s32.totalorder %s1458_s18, %s1452_s24 }
 0x445   : > { %p1461_p3 = por %p1460_p12, %p1459_p10 }
 0x447   : > { %p1462_p5 = pnand %p1461_p3, %p1455_p7 }
 0x488   : > { %v541_v48 = vpop.xlane.xlu1 %540 }
 0x489   : > { %1356 = vrcp.f32 %v541_v48 }
 0x48c   : > { %v721_v49 = vpop.xlane.xlu0 %720  ;;  %v728_v53 = vpop.permute.xlu1 %727 }
 0x48d   : > { %1358 = vrcp.f32 %v721_v49 }
 0x490   : > { %v548_v50 = vpop.permute.xlu0 %547 }
 0x491   : > { %1233 = vmatpush3.msra.mxu0 %v548_v50 }
 0x492   : > { %1242 = vmatprep.subr.mxu0 %v1575_v0 }
 0x493   : > { %v1357_v51 = vpop.eup %1356 }
 0x494   : > { %v543_v52 = vmul.f32 %v1357_v51, %v1351_v39 }
 0x496   : > { %1183 = vst.msk [vmem:[%s1834_s14 + $0x8] sm:$0xff] %vm286_vm1, %v543_v52  ;;  %1235 = vmatmul.mubr.msk.f32.vlgmr.msra.gmra.mrb[2].mxu0 %vm286_vm1, %v543_v52 }
 0x497   : > { %v1359_v54 = vpop.eup %1358  ;;  %1243 = vmatpush3.msra.mxu0 %v728_v53  ;;  %1244 = vmatprep.mubr.msk.f32.mxu0 %vm1576_vm0, %v1575_v0 }
 0x498   : > { %v723_v55 = vmul.f32 %v1359_v54, %v1353_v41  ;;  %1252 = vmatprep.subr.mxu0 %v1575_v0 }
 0x49a   : > { %1187 = vst.msk [vmem:[%s1834_s14 + $0x10] sm:$0xff] %vm286_vm1, %v723_v55  ;;  %1245 = vmatmul.mubr.msk.f32.vlgmr.msra.gmra.mrb[4].mxu0 %vm286_vm1, %v723_v55 }
 0x49b   : > { %1254 = vmatprep.mubr.msk.f32.mxu0 %vm1576_vm0, %v1575_v0 }
 0x4bd   : > { %v901_v56 = vpop.xlane.xlu1 %900 }
 0x4be   : > { %1360 = vrcp.f32 %v901_v56 }
 0x4c1   : > { %v908_v57 = vpop.permute.xlu1 %907 }
 0x4c2   : > { %1253 = vmatpush3.msra.mxu0 %v908_v57 }
 0x4c8   : > { %v1361_v58 = vpop.eup %1360 }
 0x4c9   : > { %v903_v59 = vmul.f32 %v1361_v58, %v1355_v46 }
 0x4cb   : > { %1191 = vst.msk [vmem:[%s1834_s14 + $0x18] sm:$0xff] %vm286_vm1, %v903_v59  ;;  %1255 = vmatmul.mubr.msk.f32.vlgmr.msra.gmra.mrb[6].mxu0 %vm286_vm1, %v903_v59 }
 0x569   : > { %v619_v60 = vpop.f32.mrb[2].mxu0 }
 0x56a   : > { %624 = vrot.lane.b32.xlu0 %v619_v60, %s1580_s21  ;;  %v1236_v61 = vpop.f32.mrb[3].mxu0 }
 0x56d   : > { %v799_v62 = vpop.f32.mrb[4].mxu0 }
 0x56e   : > { %804 = vrot.lane.b32.xlu1 %v799_v62, %s1581_s7  ;;  %v1246_v63 = vpop.f32.mrb[5].mxu0 }
 0x56f   : > { %1465 = shalt.err (!%p1462_p5)
}
 0x570   : > { %s1466_s13 = scalar_lea.hbm %s1886_s22, 512  ;;  %s1470_s29 = scalar_lea.hbm %s1974_s3, 1024 }
 0x571   : > { %p1467_p4 = scmp.ne.s32.totalorder %s1886_s22, %s1466_s13  ;;  %p1471_p9 = scmp.lt.u32.totalorder %s1886_s22, %s1974_s3 }
 0x572   : > { %p1472_p2 = scmp.lt.u32.totalorder %s1470_s29, %s1466_s13  ;;  %p1474_p11 = scmp.lt.u32.totalorder %s1466_s13, %s1886_s22 }
 0x573   : > { %p1468_p8 = pnand %p1467_p4, %p1744_p0 }
 0x574   : > { %p1473_p6 = por %p1472_p2, %p1471_p9 }
 0x575   : > { %p1469_p13 = pneg %p1468_p8 }
 0x576   : > { %p1475_p1 = por %p1474_p11, %p1473_p6 }
 0x578   : > { %p1476_p7 = pnand %p1475_p1, %p1469_p13 }
 0x57a   : > { %1479 = shalt.err (!%p1476_p7)
}
 0x57b   : > { %s1583_s24 = smov 128   ;;  %s1584_s27 = smov 24   ;;  %vm627_vm2 = vcmask 130112   ;;  %vm807_vm3 = vcmask 195712   ;;  %vm987_vm4 = vcmask 261312   ;;  %vm990_vm5 = vcmask 261120  }
 0x57c   : > { %1263 = dma.vmem_to_hbm [thread:$0]  (%p1744_p0), %s1889_s9, 512, %s1886_s22, %s993_s12, %s1583_s24, %s1583_s24, %s1580_s21  }
 0x57d   : > { %s281_s11 = scalar_lea.vmem [#allocation10], %s1175_s28  ;;  %s1922_s9 = scalar_lea.hbm %s1975_s4, %s1660_s26 }
 0x57e   : > { %s1029_s18 = sshll.u32 %s281_s11, 4  ;;  %s998_s12 = scalar_lea.sflag [#allocation11], %s1796_s30  ;;  %s1924_s18 = int_to_ptr.vmem [resolvable:$true] %s1029_s18 }
 0x57f   : > { %s1480_s13 = scalar_lea.vmem %s1924_s18, 128  ;;  %s1585_s28 = smov [#allocation10]  }
 0x580   : > { %p1481_p10 = scmp.ne.s32.totalorder %s1924_s18, %s1480_s13  ;;  %s1484_s14 = sshll.u32 %s1585_s28, 4  ;;  %s1485_s14 = int_to_ptr.vmem [resolvable:$false] %s1484_s14 }
 0x581   : > { %s1486_s7 = scalar_lea.vmem %s1485_s14, 256  ;;  %p1487_p5 = scmp.lt.s32.totalorder %s1924_s18, %s1485_s14 }
 0x582   : > { %p1482_p12 = pnand %p1481_p10, %p1744_p0  ;;  %p1488_p4 = scmp.lt.s32.totalorder %s1486_s7, %s1480_s13 }
 0x584   : > { %p1483_p3 = pneg %p1482_p12  ;;  %p1489_p8 = por %p1488_p4, %p1487_p5 }
 0x586   : > { %p1490_p13 = pnand %p1489_p8, %p1483_p3 }
 0x59e   : > { %v979_v0 = vpop.f32.mrb[6].mxu0 }
 0x59f   : > { %984 = vrot.lane.b32.xlu0 %v979_v0, %s1584_s27  ;;  %v1256_v1 = vpop.f32.mrb[7].mxu0 }
 0x5dc   : > { %v625_v2 = vpop.permute.xlu0 %624 }
 0x5dd   : > { %628 = vst.msk [vmem:[#allocation2] sm:$0xff] %vm627_vm2, %v625_v2 }
 0x5e0   : > { %v805_v3 = vpop.permute.xlu1 %804 }
 0x5e1   : > { %808 = vst.msk [vmem:[#allocation2] sm:$0xff] %vm807_vm3, %v805_v3 }
 0x611   : > { %v985_v4 = vpop.permute.xlu0 %984 }
 0x612   : > { %988 = vst.msk [vmem:[#allocation2] sm:$0xff] %vm987_vm4, %v985_v4 }
 0x619   : > { %v989_v5 = vld [vmem:[#allocation2] sm:$0xff] }
 0x61a   : > { %991 = vst.msk [vmem:[%s281_s11] sm:$0xff] %vm990_vm5, %v989_v5 }
 0x61b   : > { %1493 = shalt.err (!%p1490_p13)
}
 0x61c   : > { %s1494_s26 = scalar_lea.hbm %s1922_s9, 128  ;;  %s1498_s8 = scalar_lea.hbm %s1975_s4, 256 }
 0x61d   : > { %p1495_p9 = scmp.ne.s32.totalorder %s1922_s9, %s1494_s26  ;;  %p1499_p11 = scmp.lt.u32.totalorder %s1922_s9, %s1975_s4 }
 0x61e   : > { %p1500_p1 = scmp.lt.u32.totalorder %s1498_s8, %s1494_s26  ;;  %p1502_p10 = scmp.lt.u32.totalorder %s1494_s26, %s1922_s9 }
 0x61f   : > { %p1496_p2 = pnand %p1495_p9, %p1744_p0 }
 0x620   : > { %p1501_p7 = por %p1500_p1, %p1499_p11 }
 0x621   : > { %p1497_p6 = pneg %p1496_p2 }
 0x622   : > { %p1503_p12 = por %p1502_p10, %p1501_p7 }
 0x624   : > { %p1504_p3 = pnand %p1503_p12, %p1497_p6 }
 0x626   : > { %1507 = shalt.err (!%p1504_p3)
}
 0x627   : > { %1264 = dma.vmem_to_hbm [thread:$0]  (%p1744_p0), %s1924_s18, 128, %s1922_s9, %s998_s12  }
 0x628 PF: > { %s1041_s27 = sand.u32 1, %s1550_s15   ;;  %p1989_p5 = scmp.ne.s32.totalorder %s1981_s25, 0 }
 0x629   : > { %p1990_p4 = scmp.ge.s32.totalorder %s1570_s20, 2  ;;  %s1042_s11 = scalar_lea.sflag [#allocation5], %s1041_s27 }
 0x62b   : > { %p1279_p8 = pnand %p1990_p4, %p1989_p5 }
 0x62d   : > { %1541 = dma.done.wait (!%p1279_p8), %s1042_s11, 512  }
 0x62e   : > { %1543 = vsyncadd (!%p1279_p8), %s1042_s11, 4294966784  ;;  %s1051_s21 = scalar_lea.sflag [#allocation11], %s1041_s27 }
 0x62f   : > { %1545 = dma.done.wait (!%p1279_p8), %s1051_s21, 128  }
 0x630   : > { %1547 = vsyncadd (!%p1279_p8), %s1051_s21, 4294967168  ;;  %s25_s20 = sadd.s32 1, %s1570_s20   ;;  %s1991_s15 = smov %s1554_s16 }
 0x631   : > { %p22_p13 = scmp.ge.s32.totalorder %s25_s20, 4   ;;  %s1992_s16 = smov %s1558_s17 }
 0x632   : > { %s1993_s17 = smov %s1753_s5  ;;  %s1994_s18 = smov %s1566_s19 }
 0x633   : > { %s1995_s19 = smov %s1997_s6  ;;  %24 = sbr.rel (!%p22_p13) target bundleno = 9 (0x9), region = 107 }
 0x63a   :  { %1056 = vsyncpa [#allocation4], 1 }
 0x63b   :  { %1058 = vsyncpa [#allocation4 + $0x1], 1 }
 0x63c   :  { %1059 = vsyncpa [#allocation7], 1 }
 0x63d   :  { %1060 = vsyncpa [#allocation5], 1 }
 0x63e   :  { %1062 = vsyncpa [#allocation5 + $0x1], 1 }
 0x63f   :  { %1063 = vsyncpa [#allocation11], 1 }
 0x640   :  { %1065 = vsyncpa [#allocation11 + $0x1], 1 }

</bundles_post_ra>
